<compile_context>
chip_gen: v7x
topology: tpu7x:2x2x1
jax: 0.10.0
libtpu: 0.0.40
codegen_flags: <defaults>
</compile_context>

<pallas_src>
import jax
import jax.numpy as jnp
from jax.experimental import pallas as pl
from jax.experimental.pallas import tpu as pltpu


def _round_up(x, m):
    return ((x + m - 1) // m) * m


def _cdiv(a, b):
    return (a + b - 1) // b


# -----------------------------------------------------------------------------
# Kernel
# -----------------------------------------------------------------------------
def critic_mlp_kernel(s_ref, a_ref, w1s_ref, w1a_ref, b1_ref,
                      w2_ref, b2_ref, w3_ref, b3_ref, o_ref):
    # fc1 with the concat fused: cat([s, a]) @ W1 == s @ W1[:Ds] + a @ W1[Ds:]
    h1 = (jnp.dot(s_ref[...], w1s_ref[...], preferred_element_type=jnp.float32)
          + jnp.dot(a_ref[...], w1a_ref[...], preferred_element_type=jnp.float32)
          + b1_ref[...])
    h1 = jnp.maximum(h1, 0.0)                       # ReLU in f32 on the VPU
    h1 = h1.astype(w2_ref.dtype)                    # back to stream dtype for the MXU

    h2 = jnp.dot(h1, w2_ref[...], preferred_element_type=jnp.float32) + b2_ref[...]
    h2 = jnp.maximum(h2, 0.0)
    h2 = h2.astype(w3_ref.dtype)

    # fc3: (tb, H) @ (H, 1) -> (tb, 1).  Output bytes are tiny (B*4), so the
    # narrow store is irrelevant; this avoids any transpose of h2.
    q = jnp.dot(h2, w3_ref[...], preferred_element_type=jnp.float32) + b3_ref[...]
    o_ref[...] = q.astype(o_ref.dtype)


# -----------------------------------------------------------------------------
# Parameter construction / preparation
# -----------------------------------------------------------------------------
def init_critic_params(key, state_dim, action_dim, hidden_dim):
    """torch.nn.Linear-style init (U[-1/sqrt(fan_in), +1/sqrt(fan_in)]), f32,
    torch layout: w1 (D,H), b1 (H,), w2 (H,H), b2 (H,), w3 (H,1), b3 (1,)."""
    D = state_dim + action_dim
    ks = jax.random.split(key, 6)

    def lin(kw, kb, fan_in, fan_out):
        bound = fan_in ** -0.5
        w = jax.random.uniform(kw, (fan_in, fan_out), jnp.float32, -bound, bound)
        b = jax.random.uniform(kb, (fan_out,), jnp.float32, -bound, bound)
        return w, b

    w1, b1 = lin(ks[0], ks[1], D, hidden_dim)
    w2, b2 = lin(ks[2], ks[3], hidden_dim, hidden_dim)
    w3, b3 = lin(ks[4], ks[5], hidden_dim, 1)
    return (w1, b1, w2, b2, w3, b3)


def prepare_critic_params(raw_params, state_dim, *,
                          compute_dtype=jnp.bfloat16, lane_pad=True):
    """One-off prep for the kernel: split W1 into its state/action row blocks
    (concat fusion), zero-pad the hidden dim to a multiple of 128 (lane-dense
    vregs; output is mathematically unchanged), cast weights to the streaming
    dtype.  Biases stay f32 (f32 epilogue)."""
    w1, b1, w2, b2, w3, b3 = raw_params
    H = w1.shape[1]
    Hp = _round_up(H, 128) if lane_pad else H
    pad = Hp - H
    if pad:
        w1 = jnp.pad(w1, ((0, 0), (0, pad)))
        b1 = jnp.pad(b1, ((0, pad),))
        w2 = jnp.pad(w2, ((0, pad), (0, pad)))
        b2 = jnp.pad(b2, ((0, pad),))
        w3 = jnp.pad(w3, ((0, pad), (0, 0)))
    w1s, w1a = w1[:state_dim], w1[state_dim:]
    cast = lambda w: w.astype(compute_dtype)
    return (cast(w1s), cast(w1a), b1.reshape(1, Hp).astype(jnp.float32),
            cast(w2), b2.reshape(1, Hp).astype(jnp.float32),
            cast(w3), b3.reshape(1, 1).astype(jnp.float32))


# -----------------------------------------------------------------------------
# Forward
# -----------------------------------------------------------------------------
def _dense_forward(state, action, kp):
    """Small-batch fast path: same math, plain XLA dots (no kernel overhead)."""
    w1s, w1a, b1, w2, b2, w3, b3 = kp
    dt = w1s.dtype
    h1 = jnp.maximum(
        jnp.dot(state.astype(dt), w1s, preferred_element_type=jnp.float32)
        + jnp.dot(action.astype(dt), w1a, preferred_element_type=jnp.float32) + b1, 0.0)
    h2 = jnp.maximum(
        jnp.dot(h1.astype(dt), w2, preferred_element_type=jnp.float32) + b2, 0.0)
    return jnp.dot(h2.astype(dt), w3, preferred_element_type=jnp.float32) + b3


def _pick_batch_tile(B, batch_tile, max_rows=4096):
    if batch_tile is not None:
        return max(8, _round_up(min(batch_tile, B), 8))
    if B <= 1024:
        return _round_up(B, 8)                     # one tile; grid overhead already amortized
    # Large B: tiles of up to ~4096 rows, EVEN tile count so both v7x TensorCores
    # get work on the "parallel" axis (no-op on 1-TC v5e/v6e).
    n_tiles = max(2, 2 * _cdiv(B, 2 * max_rows))
    return _round_up(_cdiv(B, n_tiles), 8)


def critic_forward(state, action, kernel_params, *, batch_tile=None,
                   use_pallas=None, interpret=False):
    """state: (B, Ds), action: (B, Da) -> (B, 1) f32.  Same math as Critic.forward."""
    w1s, w1a, b1, w2, b2, w3, b3 = kernel_params
    B, Ds = state.shape
    Da = action.shape[1]
    H = w1s.shape[1]

    if use_pallas is None:
        use_pallas = B >= 2048          # below this the whole problem is < one grid step
    if not use_pallas:
        return _dense_forward(state, action, kernel_params)

    cdtype = w1s.dtype                  # stream activations at the weights' dtype (bf16 by default)
    state = state.astype(cdtype)
    action = action.astype(cdtype)

    tb = _pick_batch_tile(B, batch_tile)
    n_tiles = _cdiv(B, tb)              # ragged tail handled by Pallas boundary masking (no jnp.pad copy)

    rep = lambda i: (0, 0)              # weights/biases resident: same block every batch tile
    itemsize = jnp.dtype(cdtype).itemsize
    flops = 2 * B * H * (Ds + Da + H + 1)
    bytes_accessed = (itemsize * (B * (Ds + Da) + (Ds + Da) * H + H * H + H)
                      + 4 * (2 * H + 1 + B))

    out = pl.pallas_call(
        critic_mlp_kernel,
        out_shape=jax.ShapeDtypeStruct((B, 1), jnp.float32),
        grid_spec=pltpu.PrefetchScalarGridSpec(
            num_scalar_prefetch=0,
            grid=(n_tiles,),
            in_specs=[
                pl.BlockSpec((tb, Ds), lambda i: (i, 0)),   # state tile
                pl.BlockSpec((tb, Da), lambda i: (i, 0)),   # action tile
                pl.BlockSpec((Ds, H), rep),                 # W1 rows for state
                pl.BlockSpec((Da, H), rep),                 # W1 rows for action
                pl.BlockSpec((1, H), rep),                  # b1 (f32)
                pl.BlockSpec((H, H), rep),                  # W2
                pl.BlockSpec((1, H), rep),                  # b2 (f32)
                pl.BlockSpec((H, 1), rep),                  # W3 column
                pl.BlockSpec((1, 1), rep),                  # b3 (f32)
            ],
            out_specs=pl.BlockSpec((tb, 1), lambda i: (i, 0)),
        ),
        compiler_params=pltpu.CompilerParams(
            dimension_semantics=("parallel",),
        ),
        cost_estimate=pl.CostEstimate(
            flops=int(flops), transcendentals=0, bytes_accessed=int(bytes_accessed)),
        interpret=interpret,
    )(state, action, w1s, w1a, b1, w2, b2, w3, b3)
    return out


# -----------------------------------------------------------------------------
# Pure-JAX reference of the original torch forward (f32)
# -----------------------------------------------------------------------------
def critic_reference(state, action, raw_params):
    w1, b1, w2, b2, w3, b3 = raw_params
    x = jnp.concatenate([state, action], axis=1)
    x = jnp.maximum(x @ w1 + b1, 0.0)
    x = jnp.maximum(x @ w2 + b2, 0.0)
    return x @ w3 + b3


if __name__ == "__main__":
    key = jax.random.PRNGKey(0)
    k_s, k_a, k_p, k_s2, k_a2 = jax.random.split(key, 5)

    # Small shapes consistent with the module: critic_dims = state_dim + action_dim.
    state_dim, action_dim, hidden_dim = 24, 8, 32
    raw_params = init_critic_params(k_p, state_dim, action_dim, hidden_dim)

    # --- check 1: exact f32 path, single batch tile, forced Pallas path -------
    batch = 8
    state = jax.random.normal(k_s, (batch, state_dim), jnp.float32)
    action = jax.random.normal(k_a, (batch, action_dim), jnp.float32)
    kp_f32 = prepare_critic_params(raw_params, state_dim, compute_dtype=jnp.float32)
    out = jax.block_until_ready(critic_forward(state, action, kp_f32, use_pallas=True))
    ref = critic_reference(state, action, raw_params)
    assert out.shape == (batch, 1)
    assert jnp.allclose(out, ref, atol=1e-5, rtol=1e-5), \
        f"f32 mismatch, max abs err {float(jnp.max(jnp.abs(out - ref)))}"

    # --- check 2: multi-tile grid + ragged tail (no jnp.pad) + bf16 streaming --
    batch2 = 300
    state2 = jax.random.normal(k_s2, (batch2, state_dim), jnp.float32)
    action2 = jax.random.normal(k_a2, (batch2, action_dim), jnp.float32)
    kp_bf16 = prepare_critic_params(raw_params, state_dim, compute_dtype=jnp.bfloat16)
    out2 = jax.block_until_ready(
        critic_forward(state2, action2, kp_bf16, batch_tile=128, use_pallas=True))
    ref2 = critic_reference(state2, action2, raw_params)
    assert out2.shape == (batch2, 1)
    assert jnp.allclose(out2, ref2, atol=5e-2, rtol=5e-2), \
        f"bf16 mismatch, max abs err {float(jnp.max(jnp.abs(out2 - ref2)))}"

    print("KERNEL_OK")
</pallas_src>

<mosaic_0001>
module attributes {stable_mosaic.version = 11 : i64} {
  func.func @critic_mlp_kernel(%arg0: i32, %arg1: memref<8x24xf32, #tpu.memory_space<vmem>>, %arg2: memref<8x8xf32, #tpu.memory_space<vmem>>, %arg3: memref<24x128xf32, #tpu.memory_space<vmem>>, %arg4: memref<8x128xf32, #tpu.memory_space<vmem>>, %arg5: memref<1x128xf32, #tpu.memory_space<vmem>>, %arg6: memref<128x128xf32, #tpu.memory_space<vmem>>, %arg7: memref<1x128xf32, #tpu.memory_space<vmem>>, %arg8: memref<128x1xf32, #tpu.memory_space<vmem>>, %arg9: memref<1x1xf32, #tpu.memory_space<vmem>>, %arg10: memref<8x1xf32, #tpu.memory_space<vmem>>) attributes {dimension_semantics = [#tpu.dimension_semantics<parallel>], iteration_bounds = array<i64: 1>, scalar_prefetch = 0 : i64, scratch_operands = 0 : i64, tpu.core_type = #tpu.core_type<tc>, window_params = [{transform_indices = @transform_0, window_bounds = array<i64: 8, 24>}, {transform_indices = @transform_1, window_bounds = array<i64: 8, 8>}, {pipeline_mode = #tpu.pipeline_mode<synchronous>, transform_indices = @transform_2, window_bounds = array<i64: 24, 128>}, {pipeline_mode = #tpu.pipeline_mode<synchronous>, transform_indices = @transform_3, window_bounds = array<i64: 8, 128>}, {pipeline_mode = #tpu.pipeline_mode<synchronous>, transform_indices = @transform_4, window_bounds = array<i64: 1, 128>}, {pipeline_mode = #tpu.pipeline_mode<synchronous>, transform_indices = @transform_5, window_bounds = array<i64: 128, 128>}, {pipeline_mode = #tpu.pipeline_mode<synchronous>, transform_indices = @transform_6, window_bounds = array<i64: 1, 128>}, {pipeline_mode = #tpu.pipeline_mode<synchronous>, transform_indices = @transform_7, window_bounds = array<i64: 128, 1>}, {pipeline_mode = #tpu.pipeline_mode<synchronous>, transform_indices = @transform_8, window_bounds = array<i64: 1, 1>}, {transform_indices = @transform_9, window_bounds = array<i64: 8, 1>}]} {
    %c0 = arith.constant 0 : index
    %c0_0 = arith.constant 0 : index
    %0 = vector.load %arg1[%c0, %c0_0] : memref<8x24xf32, #tpu.memory_space<vmem>>, vector<8x24xf32>
    %c0_1 = arith.constant 0 : index
    %c0_2 = arith.constant 0 : index
    %1 = vector.load %arg3[%c0_1, %c0_2] : memref<24x128xf32, #tpu.memory_space<vmem>>, vector<24x128xf32>
    %cst = arith.constant dense<0.000000e+00> : vector<8x128xf32>
    %2 = tpu.matmul %0, %1, %cst {dimension_numbers = #tpu.dot_dimension_numbers<[1], [0], [0], [1], [0, 0, 1, 1], [], []>} : vector<8x24xf32>, vector<24x128xf32>, vector<8x128xf32> -> vector<8x128xf32>
    %c0_3 = arith.constant 0 : index
    %c0_4 = arith.constant 0 : index
    %3 = vector.load %arg2[%c0_3, %c0_4] : memref<8x8xf32, #tpu.memory_space<vmem>>, vector<8x8xf32>
    %c0_5 = arith.constant 0 : index
    %c0_6 = arith.constant 0 : index
    %4 = vector.load %arg4[%c0_5, %c0_6] : memref<8x128xf32, #tpu.memory_space<vmem>>, vector<8x128xf32>
    %cst_7 = arith.constant dense<0.000000e+00> : vector<8x128xf32>
    %5 = tpu.matmul %3, %4, %cst_7 {dimension_numbers = #tpu.dot_dimension_numbers<[1], [0], [0], [1], [0, 0, 1, 1], [], []>} : vector<8x8xf32>, vector<8x128xf32>, vector<8x128xf32> -> vector<8x128xf32>
    %6 = arith.addf %2, %5 : vector<8x128xf32>
    %c0_8 = arith.constant 0 : index
    %c0_9 = arith.constant 0 : index
    %7 = vector.load %arg5[%c0_8, %c0_9] : memref<1x128xf32, #tpu.memory_space<vmem>>, vector<1x128xf32>
    %8 = vector.broadcast %7 : vector<1x128xf32> to vector<8x128xf32>
    %9 = arith.addf %6, %8 : vector<8x128xf32>
    %cst_10 = arith.constant 0.000000e+00 : f32
    %10 = vector.broadcast %cst_10 : f32 to vector<8x128xf32>
    %11 = arith.maximumf %9, %10 : vector<8x128xf32>
    %c0_11 = arith.constant 0 : index
    %c0_12 = arith.constant 0 : index
    %12 = vector.load %arg6[%c0_11, %c0_12] : memref<128x128xf32, #tpu.memory_space<vmem>>, vector<128x128xf32>
    %cst_13 = arith.constant dense<0.000000e+00> : vector<8x128xf32>
    %13 = tpu.matmul %11, %12, %cst_13 {dimension_numbers = #tpu.dot_dimension_numbers<[1], [0], [0], [1], [0, 0, 1, 1], [], []>} : vector<8x128xf32>, vector<128x128xf32>, vector<8x128xf32> -> vector<8x128xf32>
    %c0_14 = arith.constant 0 : index
    %c0_15 = arith.constant 0 : index
    %14 = vector.load %arg7[%c0_14, %c0_15] : memref<1x128xf32, #tpu.memory_space<vmem>>, vector<1x128xf32>
    %15 = vector.broadcast %14 : vector<1x128xf32> to vector<8x128xf32>
    %16 = arith.addf %13, %15 : vector<8x128xf32>
    %cst_16 = arith.constant 0.000000e+00 : f32
    %17 = vector.broadcast %cst_16 : f32 to vector<8x128xf32>
    %18 = arith.maximumf %16, %17 : vector<8x128xf32>
    %c0_17 = arith.constant 0 : index
    %c0_18 = arith.constant 0 : index
    %19 = vector.load %arg8[%c0_17, %c0_18] : memref<128x1xf32, #tpu.memory_space<vmem>>, vector<128x1xf32>
    %cst_19 = arith.constant dense<0.000000e+00> : vector<8x1xf32>
    %20 = tpu.matmul %18, %19, %cst_19 {dimension_numbers = #tpu.dot_dimension_numbers<[1], [0], [0], [1], [0, 0, 1, 1], [], []>} : vector<8x128xf32>, vector<128x1xf32>, vector<8x1xf32> -> vector<8x1xf32>
    %c0_20 = arith.constant 0 : index
    %c0_21 = arith.constant 0 : index
    %21 = vector.load %arg9[%c0_20, %c0_21] : memref<1x1xf32, #tpu.memory_space<vmem>>, vector<1x1xf32>
    %22 = vector.broadcast %21 : vector<1x1xf32> to vector<8x1xf32>
    %23 = arith.addf %20, %22 : vector<8x1xf32>
    %c0_22 = arith.constant 0 : index
    %c0_23 = arith.constant 0 : index
    %24 = vector.load %arg10[%c0_22, %c0_23] : memref<8x1xf32, #tpu.memory_space<vmem>>, vector<8x1xf32>
    tpu.vector_store %arg10[%c0_22, %c0_23], %23 {strides = array<i32>} : memref<8x1xf32, #tpu.memory_space<vmem>>, vector<8x1xf32>,
    return
  }
  func.func @transform_0(%arg0: i32) -> (i32, i32) {
    %c0_i32 = arith.constant 0 : i32
    %c0_i32_0 = arith.constant 0 : i32
    return %arg0, %c0_i32 : i32, i32
  }
  func.func @transform_1(%arg0: i32) -> (i32, i32) {
    %c0_i32 = arith.constant 0 : i32
    %c0_i32_0 = arith.constant 0 : i32
    return %arg0, %c0_i32 : i32, i32
  }
  func.func @transform_2(%arg0: i32) -> (i32, i32) {
    %c0_i32 = arith.constant 0 : i32
    %c0_i32_0 = arith.constant 0 : i32
    %c0_i32_1 = arith.constant 0 : i32
    return %c0_i32, %c0_i32_0 : i32, i32
  }
  func.func @transform_3(%arg0: i32) -> (i32, i32) {
    %c0_i32 = arith.constant 0 : i32
    %c0_i32_0 = arith.constant 0 : i32
    %c0_i32_1 = arith.constant 0 : i32
    return %c0_i32, %c0_i32_0 : i32, i32
  }
  func.func @transform_4(%arg0: i32) -> (i32, i32) {
    %c0_i32 = arith.constant 0 : i32
    %c0_i32_0 = arith.constant 0 : i32
    %c0_i32_1 = arith.constant 0 : i32
    return %c0_i32, %c0_i32_0 : i32, i32
  }
  func.func @transform_5(%arg0: i32) -> (i32, i32) {
    %c0_i32 = arith.constant 0 : i32
    %c0_i32_0 = arith.constant 0 : i32
    %c0_i32_1 = arith.constant 0 : i32
    return %c0_i32, %c0_i32_0 : i32, i32
  }
  func.func @transform_6(%arg0: i32) -> (i32, i32) {
    %c0_i32 = arith.constant 0 : i32
    %c0_i32_0 = arith.constant 0 : i32
    %c0_i32_1 = arith.constant 0 : i32
    return %c0_i32, %c0_i32_0 : i32, i32
  }
  func.func @transform_7(%arg0: i32) -> (i32, i32) {
    %c0_i32 = arith.constant 0 : i32
    %c0_i32_0 = arith.constant 0 : i32
    %c0_i32_1 = arith.constant 0 : i32
    return %c0_i32, %c0_i32_0 : i32, i32
  }
  func.func @transform_8(%arg0: i32) -> (i32, i32) {
    %c0_i32 = arith.constant 0 : i32
    %c0_i32_0 = arith.constant 0 : i32
    %c0_i32_1 = arith.constant 0 : i32
    return %c0_i32, %c0_i32_0 : i32, i32
  }
  func.func @transform_9(%arg0: i32) -> (i32, i32) {
    %c0_i32 = arith.constant 0 : i32
    %c0_i32_0 = arith.constant 0 : i32
    return %arg0, %c0_i32 : i32, i32
  }
}

</mosaic_0001>

<bundles_post_ra>
// kernel: tpu_custom_call.1
= control target key start
LH: loop header
LB: loop body
LE: loop exit
PB: predicated region body
PF: predicated region fallthrough
CT: control target
= control target key end

     0   :  { %s869_s0 = inlined_call_operand.vmem [shape: f32[8,24], index: 0, kind: input, shape index: {}]   ;;  %s870_s1 = inlined_call_operand.vmem [shape: f32[8,8], index: 1, kind: input, shape index: {}]   ;;  %s871_s2 = inlined_call_operand.hbm [shape: f32[24,128], index: 2, kind: input, shape index: {}]   ;;  %s872_s3 = inlined_call_operand.hbm [shape: f32[8,128], index: 3, kind: input, shape index: {}]   ;;  %s873_s4 = inlined_call_operand.vmem [shape: f32[1,128], index: 4, kind: input, shape index: {}]   ;;  %s874_s5 = inlined_call_operand.vmem [shape: f32[128,128], index: 5, kind: input, shape index: {}]   ;;  %s875_s6 = inlined_call_operand.vmem [shape: f32[1,128], index: 6, kind: input, shape index: {}]   ;;  %s876_s7 = inlined_call_operand.vmem [shape: f32[128,1], index: 7, kind: input, shape index: {}]   ;;  %s877_s8 = inlined_call_operand.<no memory space> [shape: f32[1,1], index: 8, kind: input, shape index: {}]   ;;  %s878_s9 = inlined_call_operand.vmem [shape: f32[8,1], index: 9, kind: output, shape index: {}]  }
   0x1   :  { %v14_v0 = vstv %s877_s8 }
   0x2   :  { %15 = vst [vmem:[#allocation2] sm:$0x1] %v14_v0 }
   0x3   :  { %16 = vsyncpa [#allocation4], 0 }
   0x4   :  { %17 = vsyncpa [#allocation6], 0  ;;  %s653_s11 = smov [#allocation3]   ;;  %s605_s15 = scalar_lea.hbm %s871_s2, 384 }
   0x5   :  { %s27_s12 = sshll.u32 %s653_s11, 4  ;;  %p606_p0 = scmp.ne.s32.totalorder %s871_s2, %s605_s15  ;;  %s28_s12 = int_to_ptr.vmem [resolvable:$true] %s27_s12 }
   0x6   :  { %p609_p1 = scmp.lt.u32.totalorder %s605_s15, %s871_s2 }
   0x8   :  { %p611_p2 = pnand %p609_p1, %p606_p0 }
   0xa   :  { %614 = shalt.err (!%p611_p2)
}
   0xb   :  { %s615_s8 = scalar_lea.vmem %s28_s12, 384  ;;  %p620_p4 = scmp.lt.s32.totalorder %s28_s12, %s28_s12 }
   0xc   :  { %p616_p3 = scmp.ne.s32.totalorder %s28_s12, %s615_s8  ;;  %p621_p5 = scmp.lt.s32.totalorder %s615_s8, %s615_s8 }
   0xe   :  { %p622_p6 = por %p621_p5, %p620_p4 }
  0x10   :  { %p623_p7 = pnand %p622_p6, %p616_p3 }
  0x12   :  { %626 = shalt.err (!%p623_p7)
}
  0x13   :  { %s654_s20 = smov 128   ;;  %s655_s21 = smov 8  }
  0x14   :  { %33 = dma.hbm_to_vmem [thread:$0]  %s871_s2, 384, %s28_s12, [#allocation4], %s654_s20, %s654_s20, %s655_s21  }
  0x15   :  { %s656_s24 = smov [#allocation5]   ;;  %s627_s28 = scalar_lea.hbm %s872_s3, 128 }
  0x16   :  { %s40_s25 = sshll.u32 %s656_s24, 4  ;;  %p628_p8 = scmp.ne.s32.totalorder %s872_s3, %s627_s28  ;;  %s41_s25 = int_to_ptr.vmem [resolvable:$true] %s40_s25 }
  0x17   :  { %p631_p9 = scmp.lt.u32.totalorder %s627_s28, %s872_s3 }
  0x19   :  { %p633_p10 = pnand %p631_p9, %p628_p8 }
  0x1b   :  { %636 = shalt.err (!%p633_p10)
}
  0x1c   :  { %s637_s13 = scalar_lea.vmem %s41_s25, 128  ;;  %p642_p12 = scmp.lt.s32.totalorder %s41_s25, %s41_s25 }
  0x1d   :  { %p638_p11 = scmp.ne.s32.totalorder %s41_s25, %s637_s13  ;;  %p643_p13 = scmp.lt.s32.totalorder %s637_s13, %s637_s13 }
  0x1f   :  { %p644_p0 = por %p643_p13, %p642_p12 }
  0x21   :  { %p645_p1 = pnand %p644_p0, %p638_p11 }
  0x23   :  { %648 = shalt.err (!%p645_p1)
}
  0x24   :  { %43 = dma.hbm_to_vmem [thread:$0]  %s872_s3, 128, %s41_s25, [#allocation6]  }
  0x25   :  { %649 = dma.done.wait [#allocation4], 384  }
  0x26   :  { %650 = vsyncadd [#allocation4], 4294966912 }
  0x27   :  { %651 = dma.done.wait [#allocation6], 128  }
  0x28   :  { %652 = vsyncadd [#allocation6], 4294967168  ;;  %v657_v1 = vmov 0.0|0.0   ;;  %v658_v2 = vmov 0.0   ;;  %vm659_vm0 = vmmov 0   ;;  %vm66_vm1 = vcmask 64512  }
  0x29   :  { %547 = vmatprep.subr.bf16.mxu1 %v657_v1  ;;  %463 = vmatprep.subr.mxu0 %v658_v2  ;;  %v61_v3 = vld [vmem:[#allocation3] sm:$0xff]  ;;  %v62_v4 = vld [vmem:[#allocation3 + $0x8] sm:$0xff]  ;;  %v65_v5 = vld [vmem:[#allocation5] sm:$0xff]  ;;  %vm140_vm2 = vcmask 195584   ;;  %vm410_vm3 = vcmask 7168  }
  0x2a   :  { %465 = vmatprep.mubr.msk.f32.mxu0 %vm659_vm0, %v658_v2  ;;  %474 = vmatprep.mubr.msk.f32.mxu1 %vm659_vm0, %v658_v2  ;;  %v548_v6 = vpack.c.bf16 %v62_v4, %v61_v3  ;;  %v64_v7 = vld [vmem:[%s870_s1] sm:$0xff]  ;;  %v224_v9 = vld [vmem:[%s874_s5 + $0x8] sm:$0xff]  ;;  %v225_v10 = vld [vmem:[%s874_s5 + $0x10] sm:$0xff] }
  0x2b   :  { %464 = vmatpush3.msra.mxu0 %v65_v5  ;;  %v223_v8 = vld [vmem:[%s874_s5] sm:$0xff]  ;;  %v226_v12 = vld [vmem:[%s874_s5 + $0x18] sm:$0xff]  ;;  %v228_v17 = vld [vmem:[%s874_s5 + $0x28] sm:$0xff] }
  0x2c   :  { %466 = vmatmul.mubr.msk.f32.vlgmr.msra.gmra.mrb[0].mxu0 %vm66_vm1, %v64_v7  ;;  %550 = vmatprep.subr.bf16.mxu0 %v657_v1  ;;  %v551_v11 = vpack.c.bf16 %v224_v9, %v223_v8  ;;  %v63_v13 = vld [vmem:[#allocation3 + $0x10] sm:$0xff]  ;;  %v60_v14 = vld [vmem:[%s869_s0] sm:$0xff]  ;;  %v554_v15 = vpack.c.bf16 %v226_v12, %v225_v10  ;;  %v232_v23 = vld [vmem:[%s874_s5 + $0x48] sm:$0xff] }
  0x2d   :  { %549 = vmatpush3.bf16.msra.mxu1 %v548_v6  ;;  %509 = vmatprep.mubr.msk.f32.mxu0 %vm659_vm0, %v658_v2  ;;  %v227_v16 = vld [vmem:[%s874_s5 + $0x20] sm:$0xff]  ;;  %v229_v19 = vld [vmem:[%s874_s5 + $0x30] sm:$0xff]  ;;  %v230_v20 = vld [vmem:[%s874_s5 + $0x38] sm:$0xff] }
  0x2e   :  { %472 = vmatprep.subr.mxu1 %v658_v2  ;;  %552 = vmatpush3.bf16.msra.mxu0 %v551_v11  ;;  %v557_v18 = vpack.c.bf16 %v228_v17, %v227_v16  ;;  %v560_v21 = vpack.c.bf16 %v230_v20, %v229_v19  ;;  %v231_v22 = vld [vmem:[%s874_s5 + $0x40] sm:$0xff]  ;;  %v233_v25 = vld [vmem:[%s874_s5 + $0x50] sm:$0xff]  ;;  %v234_v26 = vld [vmem:[%s874_s5 + $0x58] sm:$0xff] }
  0x2f   :  { %553 = vmatprep.subr.bf16.mxu0 %v657_v1  ;;  %v563_v24 = vpack.c.bf16 %v232_v23, %v231_v22  ;;  %v566_v27 = vpack.c.bf16 %v234_v26, %v233_v25  ;;  %v235_v28 = vld [vmem:[%s874_s5 + $0x60] sm:$0xff]  ;;  %v236_v29 = vld [vmem:[%s874_s5 + $0x68] sm:$0xff]  ;;  %v237_v31 = vld [vmem:[%s874_s5 + $0x70] sm:$0xff] }
  0x30   :  { %v569_v30 = vpack.c.bf16 %v236_v29, %v235_v28  ;;  %v238_v32 = vld [vmem:[%s874_s5 + $0x78] sm:$0xff]  ;;  %v317_v34 = vld [vmem:[%s876_s7] sm:$0xff]  ;;  %v318_v35 = vld [vmem:[%s876_s7 + $0x8] sm:$0xff] }
  0x31   :  { %473 = vmatpush3.msra.mxu1 %v63_v13  ;;  %v572_v33 = vpack.c.bf16 %v238_v32, %v237_v31  ;;  %v319_v36 = vld [vmem:[%s876_s7 + $0x10] sm:$0xff]  ;;  %v575_v37 = vpack.c.bf16 %v318_v35, %v317_v34  ;;  %v320_v38 = vld [vmem:[%s876_s7 + $0x18] sm:$0xff]  ;;  %v321_v40 = vld [vmem:[%s876_s7 + $0x20] sm:$0xff] }
  0x32   :  { %475 = vmatmul.mubr.msk.f32.vlgmr.msra.gmra.mrb[0].mxu1 %vm140_vm2, %v60_v14  ;;  %574 = vmatprep.subr.bf16.mxu1 %v657_v1  ;;  %v578_v39 = vpack.c.bf16 %v320_v38, %v319_v36  ;;  %v322_v41 = vld [vmem:[%s876_s7 + $0x28] sm:$0xff]  ;;  %v323_v43 = vld [vmem:[%s876_s7 + $0x30] sm:$0xff]  ;;  %v324_v44 = vld [vmem:[%s876_s7 + $0x38] sm:$0xff] }
  0x33   :  { %555 = vmatpush3.bf16.msra.mxu0 %v554_v15  ;;  %544 = vmatprep.mubr.msk.f32.mxu1 %vm659_vm0, %v658_v2  ;;  %v581_v42 = vpack.c.bf16 %v322_v41, %v321_v40  ;;  %v584_v45 = vpack.c.bf16 %v324_v44, %v323_v43  ;;  %v325_v46 = vld [vmem:[%s876_s7 + $0x40] sm:$0xff]  ;;  %v326_v47 = vld [vmem:[%s876_s7 + $0x48] sm:$0xff]  ;;  %v327_v49 = vld [vmem:[%s876_s7 + $0x50] sm:$0xff] }
  0x34   :  { %556 = vmatprep.subr.bf16.mxu0 %v657_v1  ;;  %576 = vmatpush3.bf16.msra.mxu1 %v575_v37  ;;  %v587_v48 = vpack.c.bf16 %v326_v47, %v325_v46  ;;  %v328_v50 = vld [vmem:[%s876_s7 + $0x58] sm:$0xff]  ;;  %v329_v52 = vld [vmem:[%s876_s7 + $0x60] sm:$0xff]  ;;  %v330_v53 = vld [vmem:[%s876_s7 + $0x68] sm:$0xff] }
  0x35   :  { %577 = vmatprep.subr.bf16.mxu1 %v657_v1  ;;  %v590_v51 = vpack.c.bf16 %v328_v50, %v327_v49  ;;  %v593_v54 = vpack.c.bf16 %v330_v53, %v329_v52  ;;  %v420_v58 = vld [vmem:[%s873_s4] ss:$0 sm:$0xff]  ;;  %v331_v63 = vld [vmem:[%s876_s7 + $0x70] sm:$0xff]  ;;  %v332_v0 = vld [vmem:[%s876_s7 + $0x78] sm:$0xff] }
  0x36   :  { %v421_v2 = vld [vmem:[%s875_s6] ss:$0 sm:$0xff] }
  0x37   :  { %558 = vmatpush3.bf16.msra.mxu0 %v557_v18  ;;  %v422_v7 = vld [vmem:[#allocation2] ss:$0 sm:$0xff] }
  0x38   :  { %559 = vmatprep.subr.bf16.mxu0 %v657_v1  ;;  %579 = vmatpush3.bf16.msra.mxu1 %v578_v39 }
  0x39   :  { %580 = vmatprep.subr.bf16.mxu1 %v657_v1 }
  0x3b   :  { %561 = vmatpush3.bf16.msra.mxu0 %v560_v21 }
  0x3c   :  { %562 = vmatprep.subr.bf16.mxu0 %v657_v1  ;;  %582 = vmatpush3.bf16.msra.mxu1 %v581_v42 }
  0x3d   :  { %583 = vmatprep.subr.bf16.mxu1 %v657_v1 }
  0x3f   :  { %564 = vmatpush3.bf16.msra.mxu0 %v563_v24 }
  0x40   :  { %565 = vmatprep.subr.bf16.mxu0 %v657_v1  ;;  %585 = vmatpush3.bf16.msra.mxu1 %v584_v45 }
  0x41   :  { %586 = vmatprep.subr.bf16.mxu1 %v657_v1 }
  0x43   :  { %567 = vmatpush3.bf16.msra.mxu0 %v566_v27 }
  0x44   :  { %568 = vmatprep.subr.bf16.mxu0 %v657_v1  ;;  %588 = vmatpush3.bf16.msra.mxu1 %v587_v48 }
  0x45   :  { %589 = vmatprep.subr.bf16.mxu1 %v657_v1 }
  0x47   :  { %570 = vmatpush3.bf16.msra.mxu0 %v569_v30 }
  0x48   :  { %571 = vmatprep.subr.bf16.mxu0 %v657_v1  ;;  %591 = vmatpush3.bf16.msra.mxu1 %v590_v51 }
  0x49   :  { %592 = vmatprep.subr.bf16.mxu1 %v657_v1 }
  0x4b   :  { %573 = vmatpush3.bf16.msra.mxu0 %v572_v33 }
  0x4c   :  { %594 = vmatpush3.bf16.msra.mxu1 %v593_v54 }
  0x4d   :  { %595 = vmatprep.subr.bf16.mxu1 %v657_v1  ;;  %v596_v1 = vpack.c.bf16 %v332_v0, %v331_v63 }
  0x50   :  { %597 = vmatpush3.bf16.msra.mxu1 %v596_v1 }
  0xff   :  { %v136_v55 = vpop.f32.mrb[0].mxu0 }
 0x100   :  { %v467_v56 = vpop.f32.mrb[1].mxu0 }
 0x105   :  { %v210_v57 = vpop.f32.mrb[0].mxu1 }
 0x106   :  { %v211_v59 = vadd.f32 %v210_v57, %v136_v55  ;;  %v476_v60 = vpop.f32.mrb[1].mxu1 }
 0x108   :  { %v221_v61 = vadd.f32 %v420_v58, %v211_v59 }
 0x10a   :  { %v222_v62 = vmax.f32 %v221_v61, 0.0 }
 0x10c   :  { %510 = vmatmul.mubr.f32.vlgmr.msra.gmra.mrb[2].mxu0 %v222_v62 }
 0x1df   :  { %v312_v3 = vpop.f32.mrb[2].mxu0 }
 0x1e0   :  { %v313_v4 = vadd.f32 %v421_v2, %v312_v3  ;;  %v511_v5 = vpop.f32.mrb[3].mxu0 }
 0x1e2   :  { %v316_v6 = vmax.f32 %v313_v4, 0.0 }
 0x1e4   :  { %545 = vmatmul.mubr.f32.vlgmr.msra.gmra.mrb[2].mxu1 %v316_v6 }
 0x2b7   :  { %v406_v8 = vpop.f32.mrb[2].mxu1 }
 0x2b8   :  { %v407_v9 = vadd.f32 %v422_v7, %v406_v8  ;;  %v546_v10 = vpop.f32.mrb[3].mxu1 }
 0x2ba   :  { %411 = vst.msk [vmem:[%s878_s9] sm:$0xff] %vm410_vm3, %v407_v9 }
 0x2bb   :  { %416 = vsyncpa [#allocation4], 1 }
 0x2bc   :  { %417 = vsyncpa [#allocation6], 1 }

</bundles_post_ra>
